<compile_context>
chip_gen: v6e
topology: v6e:2x2x1
jax: 0.10.0
libtpu: 0.0.40
codegen_flags: <defaults>
</compile_context>

<pallas_src>
import functools

import jax
import jax.numpy as jnp
from jax.experimental import pallas as pl
from jax.experimental.pallas import tpu as pltpu


def _round_up(x, m):
    return ((x + m - 1) // m) * m


def actor_kernel(x_ref, w1_ref, b1_ref, w2_ref, b2_ref, wh_ref, bh_ref,
                 out_ref, *, action_dim):
    # matmul operands in bf16, accumulate in f32 on the MXU
    x = x_ref[...].astype(jnp.bfloat16)

    # hidden layer 1: Linear + ReLU
    h1 = jnp.dot(x, w1_ref[...], preferred_element_type=jnp.float32) + b1_ref[...]
    h1 = jnp.maximum(h1, 0.0).astype(jnp.bfloat16)

    # hidden layer 2: Linear + ReLU
    h2 = jnp.dot(h1, w2_ref[...], preferred_element_type=jnp.float32) + b2_ref[...]
    h2 = jnp.maximum(h2, 0.0).astype(jnp.bfloat16)

    # fused heads: one matmul against zero-padded [wm || wl || 0], one
    # lane-dense contiguous store.  Dead lanes (>= 2*action_dim) are y == 0.
    y = jnp.dot(h2, wh_ref[...], preferred_element_type=jnp.float32) + bh_ref[...]

    lane = jax.lax.broadcasted_iota(jnp.int32, y.shape, dimension=1)
    out_ref[...] = jnp.where(lane < action_dim,
                             jnp.tanh(y),                 # mean head
                             jnp.clip(y, -20.0, 2.0))     # log_std head (+ zero pad lanes)


def prepare_actor_params(params, *, lane_pad=128):
    """One-time prep (call outside the hot path): fuse + zero-pad head weights
    to a lane-dense width and cast matmul operands to bf16."""
    H = params["w1"].shape[1]
    A = params["wm"].shape[1]
    HO = 2 * A
    HO_pad = _round_up(max(HO, lane_pad), lane_pad)

    wh = jnp.zeros((H, HO_pad), jnp.float32)
    wh = wh.at[:, :A].set(params["wm"]).at[:, A:HO].set(params["wl"])
    bh = jnp.zeros((1, HO_pad), jnp.float32)
    bh = bh.at[:, :A].set(params["bm"]).at[:, A:HO].set(params["bl"])

    return dict(
        w1=params["w1"].astype(jnp.bfloat16),
        b1=params["b1"].astype(jnp.float32),
        w2=params["w2"].astype(jnp.bfloat16),
        b2=params["b2"].astype(jnp.float32),
        wh=wh.astype(jnp.bfloat16),
        bh=bh.astype(jnp.float32),
        action_dim=int(A),
    )


def actor_forward(state, prep, *, block_b=2048):
    """state: (B, state_dim) f32. prep: output of prepare_actor_params.

    Returns (action_mean, action_log_std), each (B, action_dim) f32."""
    B, S = state.shape
    w1, b1, w2, b2, wh, bh = (prep["w1"], prep["b1"], prep["w2"], prep["b2"],
                              prep["wh"], prep["bh"])
    H = w1.shape[1]
    A = prep["action_dim"]
    HO_pad = wh.shape[1]

    # Batch tile: multiple of 8 sublanes, capped at block_b, and no larger than
    # ~half the batch so the grid has >=2 steps whenever B >= 16 (both v7x TCs
    # get work via dimension_semantics=("parallel",)).
    TB = min(block_b, max(8, _round_up(-(-B // 2), 8)))
    Bp = _round_up(B, TB)
    if Bp != B:
        state = jnp.pad(state, ((0, Bp - B), (0, 0)))
    grid = (Bp // TB,)

    # Explicit scoped-VMEM budget (lane-padded tiles, double-buffered), so a
    # large TB does not silently trip v5e's 16 MiB default.
    tile_row_bytes = 4 * _round_up(max(S, 1), 128) + 4 * HO_pad        # state + out row
    weight_bytes = 2 * (2 * (w1.size + w2.size + wh.size)              # bf16 weights
                        + 4 * (b1.size + b2.size + bh.size))           # f32 biases
    vmem_limit = int(2 * TB * tile_row_bytes * 1.5 + weight_bytes + (2 << 20))
    vmem_limit = max(16 << 20, min(vmem_limit, 56 << 20))

    out = pl.pallas_call(
        functools.partial(actor_kernel, action_dim=A),
        out_shape=jax.ShapeDtypeStruct((Bp, HO_pad), jnp.float32),
        grid_spec=pltpu.PrefetchScalarGridSpec(
            num_scalar_prefetch=0,
            grid=grid,
            in_specs=[
                pl.BlockSpec((TB, S), lambda i: (i, 0)),       # state tile (pipelined)
                pl.BlockSpec((S, H), lambda i: (0, 0)),        # w1  (VMEM-resident)
                pl.BlockSpec((1, H), lambda i: (0, 0)),        # b1
                pl.BlockSpec((H, H), lambda i: (0, 0)),        # w2
                pl.BlockSpec((1, H), lambda i: (0, 0)),        # b2
                pl.BlockSpec((H, HO_pad), lambda i: (0, 0)),   # fused padded head weight
                pl.BlockSpec((1, HO_pad), lambda i: (0, 0)),   # fused padded head bias
            ],
            out_specs=pl.BlockSpec((TB, HO_pad), lambda i: (i, 0)),
        ),
        compiler_params=pltpu.CompilerParams(
            dimension_semantics=("parallel",),
            vmem_limit_bytes=vmem_limit,
        ),
    )(state, w1, b1, w2, b2, wh, bh)

    return out[:B, :A], out[:B, A:2 * A]


def init_actor_params(key, state_dim, action_dim, hidden_dim):
    """PyTorch-style uniform(-1/sqrt(fan_in), 1/sqrt(fan_in)) init.

    Weights stored pre-transposed as (in, out); biases as (1, out)."""
    def linear(k, fan_in, fan_out):
        kw, kb = jax.random.split(k)
        bound = 1.0 / jnp.sqrt(fan_in)
        w = jax.random.uniform(kw, (fan_in, fan_out), jnp.float32, -bound, bound)
        b = jax.random.uniform(kb, (1, fan_out), jnp.float32, -bound, bound)
        return w, b

    k1, k2, k3, k4 = jax.random.split(key, 4)
    w1, b1 = linear(k1, state_dim, hidden_dim)
    w2, b2 = linear(k2, hidden_dim, hidden_dim)
    wm, bm = linear(k3, hidden_dim, action_dim)
    wl, bl = linear(k4, hidden_dim, action_dim)
    return dict(w1=w1, b1=b1, w2=w2, b2=b2, wm=wm, bm=bm, wl=wl, bl=bl)


def actor_reference(state, params):
    """Pure-JAX reference using the same bf16-operand / f32-accumulate matmuls."""
    bf16 = jnp.bfloat16
    h1 = jnp.dot(state.astype(bf16), params["w1"].astype(bf16),
                 preferred_element_type=jnp.float32) + params["b1"]
    h1 = jnp.maximum(h1, 0.0)
    h2 = jnp.dot(h1.astype(bf16), params["w2"].astype(bf16),
                 preferred_element_type=jnp.float32) + params["b2"]
    h2 = jnp.maximum(h2, 0.0)
    h2b = h2.astype(bf16)
    mean = jnp.tanh(jnp.dot(h2b, params["wm"].astype(bf16),
                            preferred_element_type=jnp.float32) + params["bm"])
    log_std = jnp.clip(jnp.dot(h2b, params["wl"].astype(bf16),
                               preferred_element_type=jnp.float32) + params["bl"],
                       -20.0, 2.0)
    return mean, log_std


if __name__ == "__main__":
    key = jax.random.PRNGKey(0)
    k_params, k_state = jax.random.split(key)

    batch = 8
    state_dim = 6
    action_dim = 2
    hidden_dim = 32

    params = init_actor_params(k_params, state_dim, action_dim, hidden_dim)
    prep = prepare_actor_params(params)          # hoisted one-time weight prep
    state = jax.random.normal(k_state, (batch, state_dim), dtype=jnp.float32)

    mean, log_std = actor_forward(state, prep)
    jax.block_until_ready((mean, log_std))

    ref_mean, ref_log_std = actor_reference(state, params)
    assert mean.shape == (batch, action_dim)
    assert log_std.shape == (batch, action_dim)
    assert jnp.allclose(mean, ref_mean, atol=1e-3, rtol=1e-3)
    assert jnp.allclose(log_std, ref_log_std, atol=1e-3, rtol=1e-3)
    assert bool(jnp.all(log_std >= -20.0)) and bool(jnp.all(log_std <= 2.0))
    assert bool(jnp.all(jnp.abs(mean) <= 1.0))

    print("KERNEL_OK")
</pallas_src>

<mosaic_0001>
module attributes {stable_mosaic.version = 11 : i64} {
  func.func @actor_kernel(%arg0: i32, %arg1: memref<8x6xf32, #tpu.memory_space<vmem>>, %arg2: memref<6x32xbf16, #tpu.memory_space<vmem>>, %arg3: memref<1x32xf32, #tpu.memory_space<vmem>>, %arg4: memref<32x32xbf16, #tpu.memory_space<vmem>>, %arg5: memref<1x32xf32, #tpu.memory_space<vmem>>, %arg6: memref<32x128xbf16, #tpu.memory_space<vmem>>, %arg7: memref<1x128xf32, #tpu.memory_space<vmem>>, %arg8: memref<8x128xf32, #tpu.memory_space<vmem>>) attributes {dimension_semantics = [#tpu.dimension_semantics<parallel>], iteration_bounds = array<i64: 1>, scalar_prefetch = 0 : i64, scratch_operands = 0 : i64, tpu.core_type = #tpu.core_type<tc>, window_params = [{transform_indices = @transform_0, window_bounds = array<i64: 8, 6>}, {pipeline_mode = #tpu.pipeline_mode<synchronous>, transform_indices = @transform_1, window_bounds = array<i64: 6, 32>}, {pipeline_mode = #tpu.pipeline_mode<synchronous>, transform_indices = @transform_2, window_bounds = array<i64: 1, 32>}, {pipeline_mode = #tpu.pipeline_mode<synchronous>, transform_indices = @transform_3, window_bounds = array<i64: 32, 32>}, {pipeline_mode = #tpu.pipeline_mode<synchronous>, transform_indices = @transform_4, window_bounds = array<i64: 1, 32>}, {pipeline_mode = #tpu.pipeline_mode<synchronous>, transform_indices = @transform_5, window_bounds = array<i64: 32, 128>}, {pipeline_mode = #tpu.pipeline_mode<synchronous>, transform_indices = @transform_6, window_bounds = array<i64: 1, 128>}, {transform_indices = @transform_7, window_bounds = array<i64: 8, 128>}]} {
    %c0 = arith.constant 0 : index
    %c0_0 = arith.constant 0 : index
    %0 = vector.load %arg1[%c0, %c0_0] : memref<8x6xf32, #tpu.memory_space<vmem>>, vector<8x6xf32>
    %1 = arith.truncf %0 : vector<8x6xf32> to vector<8x6xbf16>
    %c0_1 = arith.constant 0 : index
    %c0_2 = arith.constant 0 : index
    %2 = vector.load %arg2[%c0_1, %c0_2] : memref<6x32xbf16, #tpu.memory_space<vmem>>, vector<6x32xbf16>
    %cst = arith.constant dense<0.000000e+00> : vector<8x32xf32>
    %3 = tpu.matmul %1, %2, %cst {dimension_numbers = #tpu.dot_dimension_numbers<[1], [0], [0], [1], [0, 0, 1, 1], [], []>} : vector<8x6xbf16>, vector<6x32xbf16>, vector<8x32xf32> -> vector<8x32xf32>
    %c0_3 = arith.constant 0 : index
    %c0_4 = arith.constant 0 : index
    %4 = vector.load %arg3[%c0_3, %c0_4] : memref<1x32xf32, #tpu.memory_space<vmem>>, vector<1x32xf32>
    %5 = vector.broadcast %4 : vector<1x32xf32> to vector<8x32xf32>
    %6 = arith.addf %3, %5 : vector<8x32xf32>
    %cst_5 = arith.constant 0.000000e+00 : f32
    %7 = vector.broadcast %cst_5 : f32 to vector<8x32xf32>
    %8 = arith.maximumf %6, %7 : vector<8x32xf32>
    %9 = arith.truncf %8 : vector<8x32xf32> to vector<8x32xbf16>
    %c0_6 = arith.constant 0 : index
    %c0_7 = arith.constant 0 : index
    %10 = vector.load %arg4[%c0_6, %c0_7] : memref<32x32xbf16, #tpu.memory_space<vmem>>, vector<32x32xbf16>
    %cst_8 = arith.constant dense<0.000000e+00> : vector<8x32xf32>
    %11 = tpu.matmul %9, %10, %cst_8 {dimension_numbers = #tpu.dot_dimension_numbers<[1], [0], [0], [1], [0, 0, 1, 1], [], []>} : vector<8x32xbf16>, vector<32x32xbf16>, vector<8x32xf32> -> vector<8x32xf32>
    %c0_9 = arith.constant 0 : index
    %c0_10 = arith.constant 0 : index
    %12 = vector.load %arg5[%c0_9, %c0_10] : memref<1x32xf32, #tpu.memory_space<vmem>>, vector<1x32xf32>
    %13 = vector.broadcast %12 : vector<1x32xf32> to vector<8x32xf32>
    %14 = arith.addf %11, %13 : vector<8x32xf32>
    %cst_11 = arith.constant 0.000000e+00 : f32
    %15 = vector.broadcast %cst_11 : f32 to vector<8x32xf32>
    %16 = arith.maximumf %14, %15 : vector<8x32xf32>
    %17 = arith.truncf %16 : vector<8x32xf32> to vector<8x32xbf16>
    %c0_12 = arith.constant 0 : index
    %c0_13 = arith.constant 0 : index
    %18 = vector.load %arg6[%c0_12, %c0_13] : memref<32x128xbf16, #tpu.memory_space<vmem>>, vector<32x128xbf16>
    %cst_14 = arith.constant dense<0.000000e+00> : vector<8x128xf32>
    %19 = tpu.matmul %17, %18, %cst_14 {dimension_numbers = #tpu.dot_dimension_numbers<[1], [0], [0], [1], [0, 0, 1, 1], [], []>} : vector<8x32xbf16>, vector<32x128xbf16>, vector<8x128xf32> -> vector<8x128xf32>
    %c0_15 = arith.constant 0 : index
    %c0_16 = arith.constant 0 : index
    %20 = vector.load %arg7[%c0_15, %c0_16] : memref<1x128xf32, #tpu.memory_space<vmem>>, vector<1x128xf32>
    %21 = vector.broadcast %20 : vector<1x128xf32> to vector<8x128xf32>
    %22 = arith.addf %19, %21 : vector<8x128xf32>
    %23 = tpu.iota {dimensions = array<i32: 1>} : vector<8x128xi32>
    %c2_i32 = arith.constant 2 : i32
    %24 = vector.broadcast %c2_i32 : i32 to vector<8x128xi32>
    %25 = arith.cmpi slt, %23, %24 : vector<8x128xi32>
    %26 = math.tanh %22 : vector<8x128xf32>
    %cst_17 = arith.constant -2.000000e+01 : f32
    %cst_18 = arith.constant 2.000000e+00 : f32
    %27 = vector.broadcast %cst_17 : f32 to vector<8x128xf32>
    %28 = arith.maximumf %27, %22 : vector<8x128xf32>
    %29 = vector.broadcast %cst_18 : f32 to vector<8x128xf32>
    %30 = arith.minimumf %29, %28 : vector<8x128xf32>
    %31 = arith.select %25, %26, %30 : vector<8x128xi1>, vector<8x128xf32>
    %c0_19 = arith.constant 0 : index
    %c0_20 = arith.constant 0 : index
    %32 = vector.load %arg8[%c0_19, %c0_20] : memref<8x128xf32, #tpu.memory_space<vmem>>, vector<8x128xf32>
    tpu.vector_store %arg8[%c0_19, %c0_20], %31 {strides = array<i32>} : memref<8x128xf32, #tpu.memory_space<vmem>>, vector<8x128xf32>,
    return
  }
  func.func @transform_0(%arg0: i32) -> (i32, i32) {
    %c0_i32 = arith.constant 0 : i32
    %c0_i32_0 = arith.constant 0 : i32
    return %arg0, %c0_i32 : i32, i32
  }
  func.func @transform_1(%arg0: i32) -> (i32, i32) {
    %c0_i32 = arith.constant 0 : i32
    %c0_i32_0 = arith.constant 0 : i32
    %c0_i32_1 = arith.constant 0 : i32
    return %c0_i32, %c0_i32_0 : i32, i32
  }
  func.func @transform_2(%arg0: i32) -> (i32, i32) {
    %c0_i32 = arith.constant 0 : i32
    %c0_i32_0 = arith.constant 0 : i32
    %c0_i32_1 = arith.constant 0 : i32
    return %c0_i32, %c0_i32_0 : i32, i32
  }
  func.func @transform_3(%arg0: i32) -> (i32, i32) {
    %c0_i32 = arith.constant 0 : i32
    %c0_i32_0 = arith.constant 0 : i32
    %c0_i32_1 = arith.constant 0 : i32
    return %c0_i32, %c0_i32_0 : i32, i32
  }
  func.func @transform_4(%arg0: i32) -> (i32, i32) {
    %c0_i32 = arith.constant 0 : i32
    %c0_i32_0 = arith.constant 0 : i32
    %c0_i32_1 = arith.constant 0 : i32
    return %c0_i32, %c0_i32_0 : i32, i32
  }
  func.func @transform_5(%arg0: i32) -> (i32, i32) {
    %c0_i32 = arith.constant 0 : i32
    %c0_i32_0 = arith.constant 0 : i32
    %c0_i32_1 = arith.constant 0 : i32
    return %c0_i32, %c0_i32_0 : i32, i32
  }
  func.func @transform_6(%arg0: i32) -> (i32, i32) {
    %c0_i32 = arith.constant 0 : i32
    %c0_i32_0 = arith.constant 0 : i32
    %c0_i32_1 = arith.constant 0 : i32
    return %c0_i32, %c0_i32_0 : i32, i32
  }
  func.func @transform_7(%arg0: i32) -> (i32, i32) {
    %c0_i32 = arith.constant 0 : i32
    %c0_i32_0 = arith.constant 0 : i32
    return %arg0, %c0_i32 : i32, i32
  }
}

</mosaic_0001>

<bundles_post_ra>
// kernel: tpu_custom_call.1
= control target key start
LH: loop header
LB: loop body
LE: loop exit
PB: predicated region body
PF: predicated region fallthrough
CT: control target
= control target key end

     0   :  { %12 = vsyncpa [#allocation3], 0  ;;  %s535_s0 = inlined_call_operand.hbm [shape: f32[8,6], index: 0, kind: input, shape index: {}]   ;;  %s536_s1 = inlined_call_operand.hbm [shape: bf16[6,32], index: 1, kind: input, shape index: {}]   ;;  %s537_s2 = inlined_call_operand.vmem [shape: f32[1,32], index: 2, kind: input, shape index: {}]   ;;  %s538_s3 = inlined_call_operand.hbm [shape: bf16[32,32], index: 3, kind: input, shape index: {}]   ;;  %s539_s4 = inlined_call_operand.vmem [shape: f32[1,32], index: 4, kind: input, shape index: {}]   ;;  %s540_s5 = inlined_call_operand.hbm [shape: bf16[32,128], index: 5, kind: input, shape index: {}]   ;;  %s541_s6 = inlined_call_operand.vmem [shape: f32[1,128], index: 6, kind: input, shape index: {}]   ;;  %s542_s7 = inlined_call_operand.hbm [shape: f32[8,128], index: 7, kind: output, shape index: {}]  }
   0x1   :  { %13 = vsyncpa [#allocation6], 0 }
   0x2   :  { %14 = vsyncpa [#allocation9], 0 }
   0x3   :  { %15 = vsyncpa [#allocation4], 0  ;;  %s462_s24 = smov [#allocation5]   ;;  %s463_s26 = smov [#allocation2]  }
   0x4   :  { %s32_s25 = sshll.u32 %s462_s24, 4  ;;  %s22_s27 = sshll.u32 %s463_s26, 4  ;;  %s33_s25 = int_to_ptr.vmem [resolvable:$true] %s32_s25  ;;  %s23_s27 = int_to_ptr.vmem [resolvable:$true] %s22_s27 }
   0x5   :  { %s362_s28 = scalar_lea.vmem %s33_s25, 64  ;;  %p367_p1 = scmp.lt.s32.totalorder %s33_s25, %s33_s25 }
   0x6   :  { %p363_p0 = scmp.ne.s32.totalorder %s33_s25, %s362_s28  ;;  %p368_p2 = scmp.lt.s32.totalorder %s362_s28, %s362_s28 }
   0x8   :  { %p369_p3 = por %p368_p2, %p367_p1 }
   0xa   :  { %p370_p4 = pnand %p369_p3, %p363_p0 }
   0xc   :  { %373 = shalt.err (!%p370_p4)
}
   0xd   :  { %35 = dma.hbm_to_vmem [thread:$0]  %s536_s1, 64, %s33_s25, [#allocation6]  }
   0xe   :  { %s382_s8 = scalar_lea.vmem %s23_s27, 128  ;;  %p387_p6 = scmp.lt.s32.totalorder %s23_s27, %s23_s27 }
   0xf   :  { %p383_p5 = scmp.ne.s32.totalorder %s23_s27, %s382_s8  ;;  %p388_p7 = scmp.lt.s32.totalorder %s382_s8, %s382_s8 }
  0x11   :  { %p389_p8 = por %p388_p7, %p387_p6 }
  0x13   :  { %p390_p9 = pnand %p389_p8, %p383_p5 }
  0x15   :  { %393 = shalt.err (!%p390_p9)
}
  0x16   :  { %25 = dma.hbm_to_vmem [thread:$0]  %s535_s0, 128, %s23_s27, [#allocation3]  }
  0x17   :  { %s464_s11 = smov [#allocation7]  }
  0x18   :  { %s43_s12 = sshll.u32 %s464_s11, 4  ;;  %s44_s12 = int_to_ptr.vmem [resolvable:$true] %s43_s12 }
  0x19   :  { %s402_s13 = scalar_lea.vmem %s44_s12, 256  ;;  %p407_p11 = scmp.lt.s32.totalorder %s44_s12, %s44_s12 }
  0x1a   :  { %p403_p10 = scmp.ne.s32.totalorder %s44_s12, %s402_s13  ;;  %p408_p12 = scmp.lt.s32.totalorder %s402_s13, %s402_s13 }
  0x1c   :  { %p409_p13 = por %p408_p12, %p407_p11 }
  0x1e   :  { %p410_p0 = pnand %p409_p13, %p403_p10 }
  0x20   :  { %413 = shalt.err (!%p410_p0)
}
  0x21   :  { %s465_s1 = smov 64   ;;  %s466_s14 = smov 4  }
  0x22   :  { %49 = dma.hbm_to_vmem [thread:$0]  %s538_s3, 256, %s44_s12, [#allocation6], %s465_s1, %s465_s1, %s466_s14  }
  0x23   :  { %s467_s17 = smov [#allocation8]  }
  0x24   :  { %s57_s18 = sshll.u32 %s467_s17, 4  ;;  %s58_s18 = int_to_ptr.vmem [resolvable:$true] %s57_s18 }
  0x25   :  { %s422_s0 = scalar_lea.vmem %s58_s18, 256  ;;  %p427_p2 = scmp.lt.s32.totalorder %s58_s18, %s58_s18 }
  0x26   :  { %p423_p1 = scmp.ne.s32.totalorder %s58_s18, %s422_s0  ;;  %p428_p3 = scmp.lt.s32.totalorder %s422_s0, %s422_s0 }
  0x28   :  { %p429_p4 = por %p428_p3, %p427_p2 }
  0x2a   :  { %p430_p5 = pnand %p429_p4, %p423_p1 }
  0x2c   :  { %433 = shalt.err (!%p430_p5)
}
  0x2d   :  { %63 = dma.hbm_to_vmem [thread:$0]  %s540_s5, 256, %s58_s18, [#allocation9], %s465_s1, %s465_s1, %s466_s14  }
  0x2e   :  { %454 = dma.done.wait [#allocation3], 128  }
  0x2f   :  { %455 = vsyncadd [#allocation3], 4294967168 }
  0x30   :  { %456 = dma.done.wait [#allocation6], 320  }
  0x31   :  { %457 = vsyncadd [#allocation6], 4294966976 }
  0x32   :  { %458 = dma.done.wait [#allocation9], 256  }
  0x33   :  { %459 = vsyncadd [#allocation9], 4294967040  ;;  %v468_v0 = vmov 0.0   ;;  %vm469_vm0 = vmmov 0   ;;  %vm93_vm1 = vcmask 1042432   ;;  %v79_v2 = vld [vmem:[#allocation2] sm:$0xff]  ;;  %v274_v31 = vlaneseq }
  0x34   :  { %317 = vmatprep.subr.bf16.mxu0 %v468_v0  ;;  %319 = vmatprep.mubr.msk.bf16.mxu0 %vm469_vm0, %v468_v0  ;;  %v81_v1 = vld [vmem:[#allocation5] sm:$0x7]  ;;  %v80_v4 = vpack.c.bf16 %v79_v2, %v79_v2  ;;  %vm89_vm2 = vcmask 48128   ;;  %v348_v5 = vld [vmem:[#allocation7 + $0x8] sm:$0xff]   ;;  %v349_v6 = vld [vmem:[#allocation7] sm:$0xff]   ;;  %vm162_vm3 = vcmask 261120  }
  0x35   :  { %323 = vmatprep.subr.bf16.mxu1 %v468_v0  ;;  %327 = vmatprep.mubr.msk.bf16.mxu1 %vm469_vm0, %v468_v0  ;;  %v95_v3 = vsel %vm93_vm1, %v81_v1, 0  ;;  %v350_v7 = vld [vmem:[#allocation8 + $0x8] sm:$0xff]   ;;  %v299_v8 = vld [vmem:[%s537_s2] ss:$0 sm:$0xff]  ;;  %v275_v32 = vand.u32 127, %v274_v31 }
  0x36   :  { %318 = vmatpush3.bf16.msra.mxu0 %v95_v3  ;;  %324 = vmatpush3.bf16.msra.mxu1 %v348_v5  ;;  %v351_v16 = vld [vmem:[#allocation8] sm:$0xff]  }
  0x37   :  { %331 = vmatprep.subr.bf16.mxu0 %v468_v0  ;;  %325 = vmatprep.subr.bf16.mxu1 %v468_v0  ;;  %v301_v17 = vld [vmem:[%s539_s4] ss:$0 sm:$0xff]  ;;  %s470_s4 = smov [#allocation10]   ;;  %vm276_vm4 = vcmp.lt.s32.totalorder %v275_v32, 2 }
  0x38   :  { %v305_v25 = vld [vmem:[%s541_s6] ss:$0 sm:$0xff]  ;;  %s288_s24 = sshll.u32 %s470_s4, 4  ;;  %s289_s24 = int_to_ptr.vmem [resolvable:$true] %s288_s24 }
  0x39   :  { %320 = vmatmul.mubr.msk.bf16.vlgmr.msra.gmra.mxu0 %vm89_vm2, %v80_v4  ;;  %s434_s25 = scalar_lea.vmem %s289_s24, 128  ;;  %p439_p7 = scmp.lt.s32.totalorder %s289_s24, %s289_s24 }
  0x3a   :  { %335 = vmatprep.mubr.msk.bf16.mxu0 %vm469_vm0, %v468_v0  ;;  %326 = vmatpush3.bf16.msra.mxu1 %v349_v6  ;;  %p435_p6 = scmp.ne.s32.totalorder %s289_s24, %s434_s25  ;;  %p440_p8 = scmp.lt.s32.totalorder %s434_s25, %s434_s25 }
  0x3b   :  { %332 = vmatpush3.bf16.msra.mxu0 %v350_v7 }
  0x3c   :  { %333 = vmatprep.subr.bf16.mxu0 %v468_v0  ;;  %p441_p9 = por %p440_p8, %p439_p7 }
  0x3e   :  { %p442_p10 = pnand %p441_p9, %p435_p6 }
  0x3f   :  { %334 = vmatpush3.bf16.msra.mxu0 %v351_v16 }
  0xf9   :  { %v131_v9 = vpop.f32.mrf.mxu0 }
  0xfa   :  { %v132_v10 = vadd.f32 %v299_v8, %v131_v9 }
  0xfb   :  { %v321_v11 = vpop.f32.mrf.mxu0 }
  0xfc   :  { %v137_v12 = vmax.f32 %v132_v10, 0.0 }
  0xfd   :  { %v134_v13 = vpop.f32.mrf.mxu0 }
  0xfe   :  { %v138_v14 = vpack.c.bf16 %v137_v12, %v137_v12 }
  0xff   :  { %v322_v15 = vpop.f32.mrf.mxu0 }
 0x100   :  { %328 = vmatmul.mubr.msk.bf16.vlgmr.msra.gmra.mxu1 %vm162_vm3, %v138_v14 }
 0x1c0   :  { %v200_v18 = vpop.f32.mrf.mxu1 }
 0x1c1   :  { %v201_v19 = vadd.f32 %v301_v17, %v200_v18 }
 0x1c2   :  { %v329_v20 = vpop.f32.mrf.mxu1 }
 0x1c3   :  { %v206_v21 = vmax.f32 %v201_v19, 0.0 }
 0x1c4   :  { %v203_v22 = vpop.f32.mrf.mxu1 }
 0x1c5   :  { %v207_v23 = vpack.c.bf16 %v206_v21, %v206_v21 }
 0x1c6   :  { %v330_v24 = vpop.f32.mrf.mxu1 }
 0x1c7   :  { %336 = vmatmul.mubr.msk.bf16.vlgmr.msra.gmra.mxu0 %vm162_vm3, %v207_v23 }
 0x287   :  { %v268_v26 = vpop.f32.mrf.mxu0 }
 0x288   :  { %v269_v27 = vadd.f32 %v305_v25, %v268_v26 }
 0x289   :  { %v337_v28 = vpop.f32.mrf.mxu0 }
 0x28a   :  { %352 = vtanh.f32 %v269_v27  ;;  %v278_v33 = vmax.f32 %v269_v27, -20.0 }
 0x28b   :  { %v271_v29 = vpop.f32.mrf.mxu0 }
 0x28c   :  { %v279_v34 = vmin.f32 %v278_v33, 2.0 }
 0x28d   :  { %v338_v30 = vpop.f32.mrf.mxu0 }
 0x297   :  { %v353_v35 = vpop.eup %352 }
 0x298   :  { %v280_v36 = vsel %vm276_vm4, %v353_v35, %v279_v34 }
 0x299   :  { %281 = vst [vmem:[#allocation10] sm:$0xff] %v280_v36 }
 0x29a   :  { %445 = shalt.err (!%p442_p10)
}
 0x29b   :  { %291 = dma.vmem_to_hbm [thread:$0]  %s289_s24, 128, %s542_s7, [#allocation4]  }
 0x29c   :  { %460 = dma.done.wait [#allocation4], 128  }
 0x29d   :  { %461 = vsyncadd [#allocation4], 4294967168 }
 0x29e   :  { %295 = vsyncpa [#allocation3], 1 }
 0x29f   :  { %296 = vsyncpa [#allocation6], 1 }
 0x2a0   :  { %297 = vsyncpa [#allocation9], 1 }
 0x2a1   :  { %298 = vsyncpa [#allocation4], 1 }

</bundles_post_ra>
